<compile_context>
chip_gen: v5e
topology: v5e:2x2
jax: 0.10.0
libtpu: 0.0.40
codegen_flags: <defaults>
</compile_context>

<pallas_src>
import functools

import jax
import jax.numpy as jnp
from jax.experimental import pallas as pl
from jax.experimental.pallas import tpu as pltpu

BN_EPS = 1e-5


# ---------------------------------------------------------------------------
# Pass 1: h = x @ W1 (full-K dot, W1 resident) + per-batch-tile BN partials
# ---------------------------------------------------------------------------
def _layer1_stats_kernel(x_ref, w1_ref, h_ref, sum_ref, sumsq_ref,
                         *, compute_dtype):
    # In-kernel cast: x is streamed from HBM exactly once as f32 (4 B/elem);
    # the bf16 copy never touches HBM.
    h = jnp.dot(x_ref[...].astype(compute_dtype), w1_ref[...],
                preferred_element_type=jnp.float32)
    # Per-batch-tile partial statistics, computed from the exact f32 product
    # before the bf16 cast.  Plain stores (no accumulation) -> batch axis can
    # be "parallel" (v7x megacore).
    sum_ref[...] = jnp.sum(h, axis=0, keepdims=True)[None]
    sumsq_ref[...] = jnp.sum(h * h, axis=0, keepdims=True)[None]
    # bf16 writeback halves the h HBM round-trip.
    h_ref[...] = h.astype(h_ref.dtype)


# ---------------------------------------------------------------------------
# Pass 2: out = relu(h * scale + shift) @ W2 + b2   (W2 / b2 resident)
# ---------------------------------------------------------------------------
def _bn_relu_layer2_kernel(h_ref, scale_ref, shift_ref, w2_ref, b2_ref, o_ref,
                           *, compute_dtype):
    a = jnp.maximum(h_ref[...].astype(jnp.float32) * scale_ref[...]
                    + shift_ref[...], 0.0)                         # f32 BN+ReLU
    out = jnp.dot(a.astype(compute_dtype), w2_ref[...],
                  preferred_element_type=jnp.float32)
    o_ref[...] = (out + b2_ref[...]).astype(o_ref.dtype)


def _pick_block(dim, target):
    """Largest 128-multiple <= target that divides dim, else the full dim."""
    if dim <= target:
        return dim
    b = (target // 128) * 128
    while b >= 128:
        if dim % b == 0:
            return b
        b -= 128
    return dim


def prediction_mlp_simsiam(x, w1_t, gamma, beta, w2_t, b2,
                           *, block_n=512, compute_dtype=jnp.bfloat16):
    """SimSiam prediction MLP forward.

    x:     (N, in_dim) f32
    w1_t:  (in_dim, hidden)   layer1 Linear weight, pre-transposed
    gamma: (hidden,), beta: (hidden,)   BatchNorm1d affine params
    w2_t:  (hidden, out_dim)  layer2 Linear weight, pre-transposed
    b2:    (out_dim,)         layer2 Linear bias
    """
    n, in_dim = x.shape
    hidden = w1_t.shape[1]
    out_dim = w2_t.shape[1]
    assert w1_t.shape == (in_dim, hidden)
    assert w2_t.shape == (hidden, out_dim)

    # block_n default 512 fits comfortably in the 32 MiB scoped VMEM on all
    # generations (incl. v7x); on v6e/v5e it may be raised to 1024.
    bn = _pick_block(n, block_n)
    n_tiles = n // bn

    # Weights to bf16 in the wrapper (small, and typically already bf16
    # upstream); x stays f32 and is cast inside the kernel.
    w1c = w1_t.astype(compute_dtype)
    w2c = w2_t.astype(compute_dtype)

    # ---------------- pass 1: h = x @ W1 and per-tile BN partials ------------
    h, part_sum, part_sumsq = pl.pallas_call(
        functools.partial(_layer1_stats_kernel, compute_dtype=compute_dtype),
        out_shape=(jax.ShapeDtypeStruct((n, hidden), compute_dtype),
                   jax.ShapeDtypeStruct((n_tiles, 1, hidden), jnp.float32),
                   jax.ShapeDtypeStruct((n_tiles, 1, hidden), jnp.float32)),
        grid=(n_tiles,),
        in_specs=[
            pl.BlockSpec((bn, in_dim), lambda i: (i, 0)),       # x tile (f32)
            pl.BlockSpec((in_dim, hidden), lambda i: (0, 0)),   # W1 resident
        ],
        out_specs=(
            pl.BlockSpec((bn, hidden), lambda i: (i, 0)),       # h (bf16)
            pl.BlockSpec((1, 1, hidden), lambda i: (i, 0, 0)),  # sum partial
            pl.BlockSpec((1, 1, hidden), lambda i: (i, 0, 0)),  # sumsq partial
        ),
        compiler_params=pltpu.CompilerParams(
            dimension_semantics=("parallel",),                  # v7x megacore
            vmem_limit_bytes=32 * 1024 * 1024),
        cost_estimate=pl.CostEstimate(
            flops=2 * n * in_dim * hidden,
            transcendentals=0,
            bytes_accessed=(n * in_dim * 4                      # x (f32, once)
                            + in_dim * hidden * 2               # W1 (resident)
                            + n * hidden * 2                    # h bf16 write
                            + 2 * n_tiles * hidden * 4)),       # partials
    )(x, w1c)

    # ------- tiny XLA glue: finalize full-batch BatchNorm (train mode) -------
    # Note: E[h^2] - E[h]^2 in f32; fine at SimSiam scales (see review notes).
    nf = jnp.float32(n)
    h_sum = jnp.sum(part_sum[:, 0, :], axis=0, keepdims=True)      # (1, hidden)
    h_sumsq = jnp.sum(part_sumsq[:, 0, :], axis=0, keepdims=True)  # (1, hidden)
    mean = h_sum / nf
    var = jnp.maximum(h_sumsq / nf - mean * mean, 0.0)              # biased var
    inv_std = jax.lax.rsqrt(var + BN_EPS)
    scale = gamma.reshape(1, hidden).astype(jnp.float32) * inv_std
    shift = beta.reshape(1, hidden).astype(jnp.float32) - mean * scale
    b2_2d = b2.reshape(1, out_dim).astype(jnp.float32)

    # --------------- pass 2: relu(h*scale + shift) @ W2 + b2 -----------------
    out = pl.pallas_call(
        functools.partial(_bn_relu_layer2_kernel, compute_dtype=compute_dtype),
        out_shape=jax.ShapeDtypeStruct((n, out_dim), jnp.float32),
        grid=(n_tiles,),
        in_specs=[
            pl.BlockSpec((bn, hidden), lambda i: (i, 0)),        # h tile (bf16)
            pl.BlockSpec((1, hidden), lambda i: (0, 0)),         # scale resident
            pl.BlockSpec((1, hidden), lambda i: (0, 0)),         # shift resident
            pl.BlockSpec((hidden, out_dim), lambda i: (0, 0)),   # W2 resident
            pl.BlockSpec((1, out_dim), lambda i: (0, 0)),        # b2 resident
        ],
        out_specs=pl.BlockSpec((bn, out_dim), lambda i: (i, 0)),
        compiler_params=pltpu.CompilerParams(
            dimension_semantics=("parallel",),                   # no deps
            vmem_limit_bytes=32 * 1024 * 1024),
        cost_estimate=pl.CostEstimate(
            flops=2 * n * hidden * out_dim + 4 * n * hidden,
            transcendentals=0,
            bytes_accessed=(n * hidden * 2                       # h bf16 read
                            + hidden * out_dim * 2               # W2 (resident)
                            + n * out_dim * 4                    # out f32 write
                            + 2 * hidden * 4 + out_dim * 4)),    # scale/shift/b2
    )(h, scale, shift, w2c, b2_2d)

    return out


# ---------------------------------------------------------------------------
# References
# ---------------------------------------------------------------------------
def reference_forward_f32(x, w1_t, gamma, beta, w2_t, b2):
    """Pure-f32 reference matching the PyTorch training-mode forward."""
    h = x @ w1_t
    mean = h.mean(axis=0, keepdims=True)
    var = ((h - mean) ** 2).mean(axis=0, keepdims=True)
    hbn = (h - mean) * jax.lax.rsqrt(var + BN_EPS) * gamma[None, :] + beta[None, :]
    a = jnp.maximum(hbn, 0.0)
    return a @ w2_t + b2[None, :]


def reference_forward_matched(x, w1_t, gamma, beta, w2_t, b2, compute_dtype):
    """Same math with the same bf16 matmul operands and bf16-stored h."""
    h = jnp.dot(x.astype(compute_dtype), w1_t.astype(compute_dtype),
                preferred_element_type=jnp.float32)
    mean = h.mean(axis=0, keepdims=True)
    var = ((h - mean) ** 2).mean(axis=0, keepdims=True)
    inv_std = jax.lax.rsqrt(var + BN_EPS)
    scale = gamma[None, :].astype(jnp.float32) * inv_std
    shift = beta[None, :].astype(jnp.float32) - mean * scale
    h_q = h.astype(compute_dtype).astype(jnp.float32)      # bf16-stored h
    a = jnp.maximum(h_q * scale + shift, 0.0)
    out = jnp.dot(a.astype(compute_dtype), w2_t.astype(compute_dtype),
                  preferred_element_type=jnp.float32)
    return out + b2[None, :]


if __name__ == "__main__":
    key = jax.random.PRNGKey(0)
    kx, k1, k2, k3, kg, kb = jax.random.split(key, 6)

    # Small but lane-dense (128-aligned) shapes; module defaults are 512/512/512.
    N, IN_DIM, HIDDEN, OUT_DIM = 256, 256, 256, 256

    x = jax.random.normal(kx, (N, IN_DIM), jnp.float32)
    w1 = jax.random.normal(k1, (HIDDEN, IN_DIM), jnp.float32) * (1.0 / IN_DIM ** 0.5)
    w2 = jax.random.normal(k2, (OUT_DIM, HIDDEN), jnp.float32) * (1.0 / HIDDEN ** 0.5)
    b2 = jax.random.normal(k3, (OUT_DIM,), jnp.float32) * 0.01
    gamma = 1.0 + 0.1 * jax.random.normal(kg, (HIDDEN,), jnp.float32)
    beta = 0.1 * jax.random.normal(kb, (HIDDEN,), jnp.float32)

    w1_t = w1.T            # (in_dim, hidden)
    w2_t = w2.T            # (hidden, out_dim)

    # block_n=128 -> 2 batch tiles: exercises the per-tile partial-stats path
    # and the resident-weight pipelining.
    out = prediction_mlp_simsiam(x, w1_t, gamma, beta, w2_t, b2, block_n=128)
    out = jax.block_until_ready(out)
    assert out.shape == (N, OUT_DIM)

    # Tight check against a reference using the same bf16 operands / bf16 h.
    ref_m = reference_forward_matched(x, w1_t, gamma, beta, w2_t, b2, jnp.bfloat16)
    assert jnp.allclose(out, ref_m, atol=1e-2, rtol=1e-2), \
        float(jnp.max(jnp.abs(out - ref_m)))

    # Loose check against the pure-f32 PyTorch-equivalent reference.
    ref32 = reference_forward_f32(x, w1_t, gamma, beta, w2_t, b2)
    rel = float(jnp.linalg.norm(out - ref32) / jnp.linalg.norm(ref32))
    assert rel < 2e-2, rel

    print("KERNEL_OK")
</pallas_src>

<mosaic_0001>
module attributes {stable_mosaic.version = 11 : i64} {
  func.func @_layer1_stats_kernel(%arg0: i32, %arg1: memref<128x256xf32, #tpu.memory_space<vmem>>, %arg2: memref<256x256xbf16, #tpu.memory_space<vmem>>, %arg3: memref<128x256xbf16, #tpu.memory_space<vmem>>, %arg4: memref<1x1x256xf32, #tpu.memory_space<vmem>>, %arg5: memref<1x1x256xf32, #tpu.memory_space<vmem>>) attributes {dimension_semantics = [#tpu.dimension_semantics<parallel>], iteration_bounds = array<i64: 2>, scalar_prefetch = 0 : i64, scratch_operands = 0 : i64, tpu.core_type = #tpu.core_type<tc>, window_params = [{transform_indices = @transform_0, window_bounds = array<i64: 128, 256>}, {pipeline_mode = #tpu.pipeline_mode<synchronous>, transform_indices = @transform_1, window_bounds = array<i64: 256, 256>}, {transform_indices = @transform_2, window_bounds = array<i64: 128, 256>}, {transform_indices = @transform_3, window_bounds = array<i64: 1, 1, 256>}, {transform_indices = @transform_4, window_bounds = array<i64: 1, 1, 256>}]} {
    %c0 = arith.constant 0 : index
    %c0_0 = arith.constant 0 : index
    %0 = vector.load %arg1[%c0, %c0_0] : memref<128x256xf32, #tpu.memory_space<vmem>>, vector<128x256xf32>
    %1 = arith.truncf %0 : vector<128x256xf32> to vector<128x256xbf16>
    %c0_1 = arith.constant 0 : index
    %c0_2 = arith.constant 0 : index
    %2 = vector.load %arg2[%c0_1, %c0_2] : memref<256x256xbf16, #tpu.memory_space<vmem>>, vector<256x256xbf16>
    %cst = arith.constant dense<0.000000e+00> : vector<128x256xf32>
    %3 = tpu.matmul %1, %2, %cst {dimension_numbers = #tpu.dot_dimension_numbers<[1], [0], [0], [1], [0, 0, 1, 1], [], []>} : vector<128x256xbf16>, vector<256x256xbf16>, vector<128x256xf32> -> vector<128x256xf32>
    %cst_3 = arith.constant dense<0.000000e+00> : vector<256xf32>
    %4 = vector.multi_reduction <add>, %3, %cst_3 [0] : vector<128x256xf32> to vector<256xf32>
    %5 = vector.shape_cast %4 : vector<256xf32> to vector<1x256xf32>
    %6 = vector.shape_cast %5 : vector<1x256xf32> to vector<1x1x256xf32>
    %c0_4 = arith.constant 0 : index
    %c0_5 = arith.constant 0 : index
    %c0_6 = arith.constant 0 : index
    %7 = vector.load %arg4[%c0_4, %c0_5, %c0_6] : memref<1x1x256xf32, #tpu.memory_space<vmem>>, vector<1x1x256xf32>
    tpu.vector_store %arg4[%c0_4, %c0_5, %c0_6], %6 {strides = array<i32>} : memref<1x1x256xf32, #tpu.memory_space<vmem>>, vector<1x1x256xf32>,
    %8 = arith.mulf %3, %3 : vector<128x256xf32>
    %cst_7 = arith.constant dense<0.000000e+00> : vector<256xf32>
    %9 = vector.multi_reduction <add>, %8, %cst_7 [0] : vector<128x256xf32> to vector<256xf32>
    %10 = vector.shape_cast %9 : vector<256xf32> to vector<1x256xf32>
    %11 = vector.shape_cast %10 : vector<1x256xf32> to vector<1x1x256xf32>
    %c0_8 = arith.constant 0 : index
    %c0_9 = arith.constant 0 : index
    %c0_10 = arith.constant 0 : index
    %12 = vector.load %arg5[%c0_8, %c0_9, %c0_10] : memref<1x1x256xf32, #tpu.memory_space<vmem>>, vector<1x1x256xf32>
    tpu.vector_store %arg5[%c0_8, %c0_9, %c0_10], %11 {strides = array<i32>} : memref<1x1x256xf32, #tpu.memory_space<vmem>>, vector<1x1x256xf32>,
    %13 = arith.truncf %3 : vector<128x256xf32> to vector<128x256xbf16>
    %c0_11 = arith.constant 0 : index
    %c0_12 = arith.constant 0 : index
    %14 = vector.load %arg3[%c0_11, %c0_12] : memref<128x256xbf16, #tpu.memory_space<vmem>>, vector<128x256xbf16>
    tpu.vector_store %arg3[%c0_11, %c0_12], %13 {strides = array<i32>} : memref<128x256xbf16, #tpu.memory_space<vmem>>, vector<128x256xbf16>,
    return
  }
  func.func @transform_0(%arg0: i32) -> (i32, i32) {
    %c0_i32 = arith.constant 0 : i32
    %c0_i32_0 = arith.constant 0 : i32
    return %arg0, %c0_i32 : i32, i32
  }
  func.func @transform_1(%arg0: i32) -> (i32, i32) {
    %c0_i32 = arith.constant 0 : i32
    %c0_i32_0 = arith.constant 0 : i32
    %c0_i32_1 = arith.constant 0 : i32
    return %c0_i32, %c0_i32_0 : i32, i32
  }
  func.func @transform_2(%arg0: i32) -> (i32, i32) {
    %c0_i32 = arith.constant 0 : i32
    %c0_i32_0 = arith.constant 0 : i32
    return %arg0, %c0_i32 : i32, i32
  }
  func.func @transform_3(%arg0: i32) -> (i32, i32, i32) {
    %c0_i32 = arith.constant 0 : i32
    %c0_i32_0 = arith.constant 0 : i32
    %c0_i32_1 = arith.constant 0 : i32
    return %arg0, %c0_i32, %c0_i32_0 : i32, i32, i32
  }
  func.func @transform_4(%arg0: i32) -> (i32, i32, i32) {
    %c0_i32 = arith.constant 0 : i32
    %c0_i32_0 = arith.constant 0 : i32
    %c0_i32_1 = arith.constant 0 : i32
    return %arg0, %c0_i32, %c0_i32_0 : i32, i32, i32
  }
}

</mosaic_0001>

<bundles_post_ra>
// kernel: tpu_custom_call.1
= control target key start
LH: loop header
LB: loop body
LE: loop exit
PB: predicated region body
PF: predicated region fallthrough
CT: control target
= control target key end

     0   :  { %10 = vsyncpa [#allocation3], 0  ;;  %s1854_s0 = inlined_call_operand.hbm [shape: f32[256,256], index: 0, kind: input, shape index: {}]   ;;  %s1855_s1 = inlined_call_operand.hbm [shape: bf16[256,256], index: 1, kind: input, shape index: {}]   ;;  %s1856_s2 = inlined_call_operand.hbm [shape: bf16[256,256], index: 2, kind: output, shape index: {0}]   ;;  %s1857_s3 = inlined_call_operand.hbm [shape: f32[2,1,256], index: 3, kind: output, shape index: {1}]   ;;  %s1858_s4 = inlined_call_operand.hbm [shape: f32[2,1,256], index: 4, kind: output, shape index: {2}]  }
   0x1   :  { %12 = vsyncpa [#allocation3 + $0x1], 0 }
   0x2   :  { %13 = vsyncpa [#allocation6], 0 }
   0x3   :  { %14 = vsyncpa [#allocation4], 0 }
   0x4   :  { %16 = vsyncpa [#allocation4 + $0x1], 0 }
   0x5   :  { %17 = vsyncpa [#allocation9], 0 }
   0x6   :  { %19 = vsyncpa [#allocation9 + $0x1], 0  ;;  %s1543_s15 = smov 0   ;;  %s1545_s16 = smov 0  }
   0x7   :  { %s1547_s17 = smov 0   ;;  %s1549_s18 = smov 0  }
   0x8 LB: > { %s1564_s19 = sadd.s32 4294967295, %s1509_s18   ;;  %s1058_s20 = sadd.s32 4294967294, %s1509_s18   ;;  %s1509_s18 = sphi %s1549_s18, %s1870_s18   ;;  %s1505_s17 = sphi %s1547_s17, %s1869_s17   ;;  %s1501_s16 = sphi %s1545_s16, %s1868_s16   ;;  %s1497_s15 = sphi %s1543_s15, %s1867_s15  }
   0x9   : > { %p45_p0 = scmp.ne.s32.totalorder %s1501_s16, %s1497_s15  ;;  %p46_p1 = scmp.eq.s32.totalorder %s1564_s19, 0 }
   0xa   : > { %p90_p2 = scmp.eq.s32.totalorder %s1564_s19, 1  ;;  %p96_p3 = scmp.eq.s32.totalorder %s1058_s20, 1 }
   0xb   : > { %p1575_p4 = por %p46_p1, %p45_p0  ;;  %p1059_p5 = scmp.ge.s32.totalorder %s1509_s18, 1 }
   0xc   : > { %p1580_p6 = por %p96_p3, %p45_p0  ;;  %p155_p7 = scmp.lt.s32.totalorder %s1509_s18, 3 }
   0xd   : > { %s166_s25 = sshll.u32 %s1855_s1, 4  ;;  %s1511_s27 = smov [#allocation5]   ;;  %s167_s25 = int_to_ptr.hbm [resolvable:$true] %s166_s25 }
   0xe   : > { %p1588_p8 = pnand %p1059_p5, %p155_p7  ;;  %s168_s28 = sshll.u32 %s1511_s27, 4  ;;  %s169_s28 = int_to_ptr.vmem [resolvable:$true] %s168_s28 }
   0xf   : > { %s1598_s29 = sadd.s32 1, %s1509_s18   ;;  %s1512_s30 = smov 128  }
  0x10   : > { %p1258_p9 = pneg %p1588_p8  ;;  %s1513_s5 = smov 8  }
  0x11   : > { %s29_s6 = ssub.s32 %s1509_s18, %s1598_s29  ;;  %s32_s7 = sadd.s32 1, %s1505_s17 }
  0x12   : > { %p1259_p10 = pnand %p1258_p9, %p46_p1  ;;  %p30_p12 = scmp.eq.s32.totalorder %s29_s6, 0 }
  0x13   : > { %p39_p13 = scmp.ne.s32.totalorder %s1505_s17, %s1501_s16  ;;  %p40_p0 = scmp.eq.s32.totalorder %s1509_s18, 0 }
  0x14   : > { %1261 = dma.hbm_to_vmem [thread:$0]  (!%p1259_p10), %s167_s25, 4096, %s169_s28, [#allocation6], %s1512_s30, %s1512_s30, %s1513_s5  }
  0x15   : > { %p1277_p3 = scmp.lt.s32.totalorder %s1509_s18, 2  ;;  %p41_p5 = por %p40_p0, %p39_p13 }
  0x16   : > { %s1608_s8 = scalar_select %p30_p12, %s1505_s17, %s32_s7  }
  0x17   : > { %p1612_p7 = por %p90_p2, %p39_p13  ;;  %s182_s10 = sand.u32 1, %s1505_s17  }
  0x18   : > { %s1211_s11 = sshll.u32 %s1509_s18, 8  ;;  %s1062_s12 = sshll.u32 %s182_s10, 8 }
  0x19   : > { %s192_s23 = scalar_lea.hbm %s1854_s0, %s1211_s11  ;;  %s186_s25 = scalar_lea.vmem [#allocation2], %s1062_s12 }
  0x1a   : > { %s193_s24 = sshll.u32 %s192_s23, 4  ;;  %s195_s27 = sshll.u32 %s186_s25, 4  ;;  %s194_s24 = int_to_ptr.hbm [resolvable:$true] %s193_s24  ;;  %s196_s27 = int_to_ptr.vmem [resolvable:$true] %s195_s27 }
  0x1b   : > { %p1623_p9 = pnand %p1277_p3, %p41_p5  ;;  %s183_s30 = scalar_lea.sflag [#allocation3], %s182_s10 }
  0x1c   : > { %s1349_s5 = sshra.s32 %s194_s24, 4  ;;  %s1356_s12 = scalar_lea.hbm %s1854_s0, 512  ;;  %s1350_s5 = int_to_ptr.hbm [resolvable:$true] %s1349_s5 }
  0x1d   : > { %s1351_s6 = scalar_lea.hbm %s1350_s5, 256  ;;  %p1353_p10 = pneg %p1623_p9 }
  0x1e   : > { %p1352_p2 = scmp.ne.s32.totalorder %s1350_s5, %s1351_s6  ;;  %p1357_p0 = scmp.lt.s32.totalorder %s1350_s5, %s1854_s0 }
  0x1f   : > { %p1358_p3 = scmp.lt.s32.totalorder %s1356_s12, %s1351_s6 }
  0x20   : > { %p1354_p12 = pnand %p1353_p10, %p1352_p2 }
  0x21   : > { %p1359_p5 = por %p1358_p3, %p1357_p0 }
  0x22   : > { %p1355_p13 = pneg %p1354_p12 }
  0x24   : > { %p1360_p11 = pnand %p1359_p5, %p1355_p13 }
  0x26   : > { %1363 = shalt.err (!%p1360_p11)
}
  0x27   : > { %s1514_s10 = smov 256   ;;  %s1515_s23 = smov 16  }
  0x28   : > { %1265 = dma.hbm_to_vmem [thread:$0]  (!%p1623_p9), %s194_s24, 4096, %s196_s27, %s183_s30, %s1514_s10, %s1514_s10, %s1515_s23  }
  0x29   : > { %207 = sbr.rel (%p1588_p8) target bundleno = 376 (0x178), region = 28  ;;  %s1640_s25 = sand.u32 (!%p1588_p8), 1, %s1501_s16  }
  0x2a   : > { %s1067_s7 = sshll.u32 (!%p1588_p8), %s1640_s25, 8  ;;  %s210_s5 = scalar_lea.sflag (!%p1588_p8), [#allocation3], %s1640_s25 }
  0x2b   : > { %s1644_s6 = scalar_lea.vmem (!%p1588_p8), [#allocation2], %s1067_s7 }
  0x2e   : > { %1480 = dma.done.wait (%p1575_p4), %s210_s5, 4096  }
  0x2f   : > { %1482 = vsyncadd (%p1575_p4), %s210_s5, 4294963200 }
  0x30   : > { %1484 = dma.done.wait (%p46_p1), [#allocation6], 4096  }
  0x31   : > { %1486 = vsyncadd (%p46_p1), [#allocation6], 4294963200  ;;  %v1130_v0 = vld [vmem:[#allocation5 + $0x70] sm:$0xf]  ;;  %v1227_v1 = vld [vmem:[#allocation5 + $0x74] sm:$0xf0] }
  0x32   : > { %v1194_v2 = vld [vmem:[#allocation5 + $0xf0] sm:$0xf]  ;;  %v1131_v3 = vor.u32 %v1227_v1, %v1130_v0  ;;  %v1243_v4 = vld [vmem:[#allocation5 + $0xf4] sm:$0xf0]  ;;  %v1226_v5 = vld [vmem:[#allocation5 + $0x74] sm:$0xf] }
  0x33   : > { %v1132_v6 = vld [vmem:[#allocation5 + $0x78] sm:$0xf0]  ;;  %v1195_v7 = vor.u32 %v1243_v4, %v1194_v2  ;;  %v1242_v9 = vld [vmem:[#allocation5 + $0xf4] sm:$0xf]  ;;  %v1122_v11 = vld [vmem:[#allocation5 + $0x60] sm:$0xf] }
  0x34   : > { %v1135_v8 = vor.u32 %v1226_v5, %v1132_v6  ;;  %v1196_v10 = vld [vmem:[#allocation5 + $0xf8] sm:$0xf0]  ;;  %496 = vmatpush.bf16.msra.mxu0 %v1131_v3  ;;  %v1225_v13 = vld [vmem:[#allocation5 + $0x64] sm:$0xf0]  ;;  %v1186_v14 = vld [vmem:[#allocation5 + $0xe0] sm:$0xf] }
  0x35   : > { %v1199_v12 = vor.u32 %v1242_v9, %v1196_v10  ;;  %v1241_v15 = vld [vmem:[#allocation5 + $0xe4] sm:$0xf0]  ;;  %545 = vmatpush.bf16.msra.mxu1 %v1195_v7  ;;  %v1123_v16 = vor.u32 %v1225_v13, %v1122_v11  ;;  %v1224_v18 = vld [vmem:[#allocation5 + $0x64] sm:$0xf]  ;;  %v1124_v19 = vld [vmem:[#allocation5 + $0x68] sm:$0xf0] }
  0x36   : > { %594 = vmatpush.bf16.msra.mxu2 %v1135_v8  ;;  %v1187_v17 = vor.u32 %v1241_v15, %v1186_v14  ;;  %v1240_v20 = vld [vmem:[#allocation5 + $0xe4] sm:$0xf]  ;;  %v1127_v21 = vor.u32 %v1224_v18, %v1124_v19  ;;  %v1188_v22 = vld [vmem:[#allocation5 + $0xe8] sm:$0xf0]  ;;  %v1114_v23 = vld [vmem:[#allocation5 + $0x50] sm:$0xf] }
  0x37   : > { %643 = vmatpush.bf16.msra.mxu3 %v1199_v12  ;;  %v1223_v24 = vld [vmem:[#allocation5 + $0x54] sm:$0xf0]  ;;  %v1191_v25 = vor.u32 %v1240_v20, %v1188_v22  ;;  %v1178_v26 = vld [vmem:[#allocation5 + $0xd0] sm:$0xf]  ;;  %v1222_v28 = vld [vmem:[#allocation5 + $0x54] sm:$0xf] }
  0x38   : > { %v1239_v27 = vld [vmem:[#allocation5 + $0xd4] sm:$0xf0]  ;;  %497 = vmatpush.bf16.msra.mxu0 %v1123_v16  ;;  %v1115_v29 = vor.u32 %v1223_v24, %v1114_v23  ;;  %v1116_v30 = vld [vmem:[#allocation5 + $0x58] sm:$0xf0]  ;;  %v1238_v31 = vld [vmem:[#allocation5 + $0xd4] sm:$0xf] }
  0x39   : > { %v1180_v32 = vld [vmem:[#allocation5 + $0xd8] sm:$0xf0]  ;;  %546 = vmatpush.bf16.msra.mxu1 %v1187_v17  ;;  %v1179_v33 = vor.u32 %v1239_v27, %v1178_v26  ;;  %v1119_v34 = vor.u32 %v1222_v28, %v1116_v30  ;;  %v1106_v35 = vld [vmem:[#allocation5 + $0x40] sm:$0xf]  ;;  %v1221_v36 = vld [vmem:[#allocation5 + $0x44] sm:$0xf0] }
  0x3a   : > { %595 = vmatpush.bf16.msra.mxu2 %v1127_v21  ;;  %v1170_v37 = vld [vmem:[#allocation5 + $0xc0] sm:$0xf]  ;;  %v1183_v38 = vor.u32 %v1238_v31, %v1180_v32  ;;  %v1237_v39 = vld [vmem:[#allocation5 + $0xc4] sm:$0xf0]  ;;  %v1220_v40 = vld [vmem:[#allocation5 + $0x44] sm:$0xf]  ;;  %v1107_v44 = vor.u32 %v1221_v36, %v1106_v35 }
  0x3b   : > { %644 = vmatpush.bf16.msra.mxu3 %v1191_v25  ;;  %v1108_v41 = vld [vmem:[#allocation5 + $0x48] sm:$0xf0]  ;;  %v1236_v42 = vld [vmem:[#allocation5 + $0xc4] sm:$0xf]  ;;  %v1171_v45 = vor.u32 %v1237_v39, %v1170_v37  ;;  %v1098_v47 = vld [vmem:[#allocation5 + $0x30] sm:$0xf] }
  0x3c   : > { %v1172_v43 = vld [vmem:[#allocation5 + $0xc8] sm:$0xf0]  ;;  %498 = vmatpush.bf16.msra.mxu0 %v1115_v29  ;;  %v1111_v46 = vor.u32 %v1220_v40, %v1108_v41  ;;  %v1219_v48 = vld [vmem:[#allocation5 + $0x34] sm:$0xf0]  ;;  %v1162_v49 = vld [vmem:[#allocation5 + $0xb0] sm:$0xf] }
  0x3d   : > { %547 = vmatpush.bf16.msra.mxu1 %v1179_v33  ;;  %v1175_v50 = vor.u32 %v1236_v42, %v1172_v43  ;;  %v1235_v51 = vld [vmem:[#allocation5 + $0xb4] sm:$0xf0]  ;;  %v1218_v52 = vld [vmem:[#allocation5 + $0x34] sm:$0xf]  ;;  %v1100_v53 = vld [vmem:[#allocation5 + $0x38] sm:$0xf0]  ;;  %v1099_v56 = vor.u32 %v1219_v48, %v1098_v47 }
  0x3e   : > { %596 = vmatpush.bf16.msra.mxu2 %v1119_v34  ;;  %v1234_v54 = vld [vmem:[#allocation5 + $0xb4] sm:$0xf]  ;;  %v1164_v55 = vld [vmem:[#allocation5 + $0xb8] sm:$0xf0]  ;;  %v1163_v57 = vor.u32 %v1235_v51, %v1162_v49  ;;  %v1103_v58 = vor.u32 %v1218_v52, %v1100_v53  ;;  %v1090_v59 = vld [vmem:[#allocation5 + $0x20] sm:$0xf] }
  0x3f   : > { %645 = vmatpush.bf16.msra.mxu3 %v1183_v38  ;;  %v1217_v60 = vld [vmem:[#allocation5 + $0x24] sm:$0xf0]  ;;  %v1154_v61 = vld [vmem:[#allocation5 + $0xa0] sm:$0xf]  ;;  %v1167_v62 = vor.u32 %v1234_v54, %v1164_v55  ;;  %v1216_v0 = vld [vmem:[#allocation5 + $0x24] sm:$0xf] }
  0x40   : > { %499 = vmatpush.bf16.msra.mxu0 %v1107_v44  ;;  %v1233_v63 = vld [vmem:[#allocation5 + $0xa4] sm:$0xf0]  ;;  %v1092_v1 = vld [vmem:[#allocation5 + $0x28] sm:$0xf0]  ;;  %v1232_v2 = vld [vmem:[#allocation5 + $0xa4] sm:$0xf]  ;;  %v1091_v4 = vor.u32 %v1217_v60, %v1090_v59 }
  0x41   : > { %548 = vmatpush.bf16.msra.mxu1 %v1171_v45  ;;  %v1156_v3 = vld [vmem:[#allocation5 + $0xa8] sm:$0xf0]  ;;  %v1155_v5 = vor.u32 %v1233_v63, %v1154_v61  ;;  %v1095_v6 = vor.u32 %v1216_v0, %v1092_v1  ;;  %v1082_v7 = vld [vmem:[#allocation5 + $0x10] sm:$0xf]  ;;  %v1215_v8 = vld [vmem:[#allocation5 + $0x14] sm:$0xf0] }
  0x42   : > { %597 = vmatpush.bf16.msra.mxu2 %v1111_v46  ;;  %v1146_v9 = vld [vmem:[#allocation5 + $0x90] sm:$0xf]  ;;  %v1159_v10 = vor.u32 %v1232_v2, %v1156_v3  ;;  %v1231_v11 = vld [vmem:[#allocation5 + $0x94] sm:$0xf0]  ;;  %v1214_v12 = vld [vmem:[#allocation5 + $0x14] sm:$0xf]  ;;  %v1083_v16 = vor.u32 %v1215_v8, %v1082_v7 }
  0x43   : > { %646 = vmatpush.bf16.msra.mxu3 %v1175_v50  ;;  %v1084_v13 = vld [vmem:[#allocation5 + $0x18] sm:$0xf0]  ;;  %v1230_v14 = vld [vmem:[#allocation5 + $0x94] sm:$0xf]  ;;  %v1147_v17 = vor.u32 %v1231_v11, %v1146_v9  ;;  %v1074_v19 = vld [vmem:[#allocation5] sm:$0xf] }
  0x44   : > { %500 = vmatpush.bf16.msra.mxu0 %v1099_v56  ;;  %v1148_v15 = vld [vmem:[#allocation5 + $0x98] sm:$0xf0]  ;;  %v1087_v18 = vor.u32 %v1214_v12, %v1084_v13  ;;  %v1213_v20 = vld [vmem:[#allocation5 + $0x4] sm:$0xf0]  ;;  %v1138_v21 = vld [vmem:[#allocation5 + $0x80] sm:$0xf] }
  0x45   : > { %549 = vmatpush.bf16.msra.mxu1 %v1163_v57  ;;  %v1151_v22 = vor.u32 %v1230_v14, %v1148_v15  ;;  %v1229_v23 = vld [vmem:[#allocation5 + $0x84] sm:$0xf0]  ;;  %v1212_v24 = vld [vmem:[#allocation5 + $0x4] sm:$0xf]  ;;  %v1076_v25 = vld [vmem:[#allocation5 + $0x8] sm:$0xf0]  ;;  %v1075_v28 = vor.u32 %v1213_v20, %v1074_v19 }
  0x46   : > { %598 = vmatpush.bf16.msra.mxu2 %v1103_v58  ;;  %v1228_v26 = vld [vmem:[#allocation5 + $0x84] sm:$0xf]  ;;  %v1140_v27 = vld [vmem:[#allocation5 + $0x88] sm:$0xf0]  ;;  %v258_v30 = vld [vmem:[%s1644_s6 + $0x10] sm:$0xff]  ;;  %v1139_v31 = vor.u32 %v1229_v23, %v1138_v21  ;;  %v1079_v32 = vor.u32 %v1212_v24, %v1076_v25  ;;  %s1069_s21 = sshll.u32 %s1640_s25, 7 }
  0x47   : > { %647 = vmatpush.bf16.msra.mxu3 %v1167_v62  ;;  %v256_v29 = vld [vmem:[%s1644_s6] sm:$0xff]  ;;  %v257_v33 = vld [vmem:[%s1644_s6 + $0x8] sm:$0xff]  ;;  %v259_v34 = vld [vmem:[%s1644_s6 + $0x18] sm:$0xff]  ;;  %v1143_v35 = vor.u32 %v1228_v26, %v1140_v27  ;;  %s1687_s26 = scalar_lea.vmem [#allocation7], %s1069_s21  ;;  %s1245_s24 = sshll.u32 %s1564_s19, 7 }
  0x48   : > { %501 = vmatpush.bf16.msra.mxu0 %v1091_v4  ;;  %v288_v36 = vpack.c.bf16 %v258_v30, %v256_v29  ;;  %v289_v37 = vpack.c.bf16 %v259_v34, %v257_v33  ;;  %v260_v38 = vld [vmem:[%s1644_s6 + $0x20] sm:$0xff]  ;;  %v262_v39 = vld [vmem:[%s1644_s6 + $0x30] sm:$0xff]  ;;  %v261_v40 = vld [vmem:[%s1644_s6 + $0x28] sm:$0xff]  ;;  %s880_s30 = scalar_lea.hbm %s1856_s2, %s1245_s24  ;;  %s881_s11 = sshll.u32 %s1687_s26, 4  ;;  %s1769_s11 = int_to_ptr.vmem [resolvable:$true] %s881_s11 }
  0x49   : > { %550 = vmatpush.bf16.msra.mxu1 %v1155_v5  ;;  %v263_v41 = vld [vmem:[%s1644_s6 + $0x38] sm:$0xff]  ;;  %v290_v42 = vpack.c.bf16 %v262_v39, %v260_v38  ;;  %v264_v44 = vld [vmem:[%s1644_s6 + $0x40] sm:$0xff]  ;;  %v266_v45 = vld [vmem:[%s1644_s6 + $0x50] sm:$0xff]  ;;  %s883_s12 = sshll.u32 %s880_s30, 4  ;;  %s858_s13 = scalar_lea.sflag [#allocation4], %s1640_s25  ;;  %s884_s12 = int_to_ptr.hbm [resolvable:$true] %s883_s12 }
  0x4a   : > { %599 = vmatpush.bf16.msra.mxu2 %v1095_v6  ;;  %v291_v43 = vpack.c.bf16 %v263_v41, %v261_v40  ;;  %v265_v46 = vld [vmem:[%s1644_s6 + $0x48] sm:$0xff]  ;;  %v267_v47 = vld [vmem:[%s1644_s6 + $0x58] sm:$0xff]  ;;  %v292_v48 = vpack.c.bf16 %v266_v45, %v264_v44  ;;  %v268_v50 = vld [vmem:[%s1644_s6 + $0x60] sm:$0xff]  ;;  %s1393_s14 = sshra.s32 %s884_s12, 4  ;;  %s1399_s5 = scalar_lea.hbm %s1856_s2, 256  ;;  %s1394_s14 = int_to_ptr.hbm [resolvable:$true] %s1393_s14 }
  0x4b   : > { %648 = vmatpush.bf16.msra.mxu3 %v1159_v10  ;;  %v293_v49 = vpack.c.bf16 %v267_v47, %v265_v46  ;;  %v270_v51 = vld [vmem:[%s1644_s6 + $0x70] sm:$0xff]  ;;  %v269_v52 = vld [vmem:[%s1644_s6 + $0x68] sm:$0xff]  ;;  %v271_v53 = vld [vmem:[%s1644_s6 + $0x78] sm:$0xff]  ;;  %s1395_s10 = scalar_lea.hbm %s1394_s14, 128  ;;  %p1400_p11 = scmp.lt.s32.totalorder %s1394_s14, %s1856_s2 }
  0x4c   : > { %502 = vmatpush.bf16.msra.mxu0 %v1083_v16  ;;  %v294_v54 = vpack.c.bf16 %v270_v51, %v268_v50  ;;  %v295_v55 = vpack.c.bf16 %v271_v53, %v269_v52  ;;  %v272_v56 = vld [vmem:[%s1644_s6 + $0x80] sm:$0xff]  ;;  %v274_v57 = vld [vmem:[%s1644_s6 + $0x90] sm:$0xff]  ;;  %v273_v58 = vld [vmem:[%s1644_s6 + $0x88] sm:$0xff]  ;;  %p1396_p1 = scmp.ne.s32.totalorder %s1394_s14, %s1395_s10  ;;  %p1401_p9 = scmp.lt.s32.totalorder %s1399_s5, %s1395_s10 }
  0x4d   : > { %551 = vmatpush.bf16.msra.mxu1 %v1147_v17  ;;  %v275_v59 = vld [vmem:[%s1644_s6 + $0x98] sm:$0xff]  ;;  %v296_v60 = vpack.c.bf16 %v274_v57, %v272_v56  ;;  %v276_v62 = vld [vmem:[%s1644_s6 + $0xa0] sm:$0xff]  ;;  %v278_v63 = vld [vmem:[%s1644_s6 + $0xb0] sm:$0xff] }
  0x4e   : > { %600 = vmatpush.bf16.msra.mxu2 %v1087_v18  ;;  %v297_v61 = vpack.c.bf16 %v275_v59, %v273_v58  ;;  %v277_v0 = vld [vmem:[%s1644_s6 + $0xa8] sm:$0xff]  ;;  %v279_v1 = vld [vmem:[%s1644_s6 + $0xb8] sm:$0xff]  ;;  %v298_v2 = vpack.c.bf16 %v278_v63, %v276_v62  ;;  %v280_v4 = vld [vmem:[%s1644_s6 + $0xc0] sm:$0xff]  ;;  %p1397_p4 = pnand %p1396_p1, %p1612_p7  ;;  %p1402_p2 = por %p1401_p9, %p1400_p11 }
  0x4f   : > { %649 = vmatpush.bf16.msra.mxu3 %v1151_v22  ;;  %v299_v3 = vpack.c.bf16 %v279_v1, %v277_v0  ;;  %v282_v5 = vld [vmem:[%s1644_s6 + $0xd0] sm:$0xff]  ;;  %v281_v6 = vld [vmem:[%s1644_s6 + $0xc8] sm:$0xff]  ;;  %v283_v7 = vld [vmem:[%s1644_s6 + $0xd8] sm:$0xff] }
  0x50   : > { %503 = vmatpush.bf16.msra.mxu0 %v1075_v28  ;;  %v300_v8 = vpack.c.bf16 %v282_v5, %v280_v4  ;;  %v301_v9 = vpack.c.bf16 %v283_v7, %v281_v6  ;;  %v284_v10 = vld [vmem:[%s1644_s6 + $0xe0] sm:$0xff]  ;;  %v286_v11 = vld [vmem:[%s1644_s6 + $0xf0] sm:$0xff]  ;;  %v285_v12 = vld [vmem:[%s1644_s6 + $0xe8] sm:$0xff]  ;;  %p1398_p8 = pneg %p1397_p4 }
  0x51   : > { %552 = vmatpush.bf16.msra.mxu1 %v1139_v31  ;;  %v287_v13 = vld [vmem:[%s1644_s6 + $0xf8] sm:$0xff]  ;;  %v302_v14 = vpack.c.bf16 %v286_v11, %v284_v10 }
  0x52   : > { %601 = vmatpush.bf16.msra.mxu2 %v1079_v32  ;;  %v303_v15 = vpack.c.bf16 %v287_v13, %v285_v12  ;;  %p1403_p10 = pnand %p1402_p2, %p1398_p8 }
  0x53   : > { %650 = vmatpush.bf16.msra.mxu3 %v1143_v35  ;;  %504 = vmatmul.bf16.vlgmr.msra.gmra.mxu0 %v288_v36 }
  0x54   : > { %553 = vmatmul.bf16.vlgmr.msra.gmra.mxu1 %v289_v37 }
  0x55   : > { %602 = vmatmul.bf16.vlgmr.msra.gmra.mxu2 %v288_v36 }
  0x56   : > { %651 = vmatmul.bf16.vlgmr.msra.gmra.mxu3 %v289_v37 }
  0x63   : > { %509 = vmatmul.bf16.gmra.mxu0 %v290_v42 }
  0x64   : > { %558 = vmatmul.bf16.gmra.mxu1 %v291_v43 }
  0x65   : > { %607 = vmatmul.bf16.gmra.mxu2 %v290_v42 }
  0x66   : > { %656 = vmatmul.bf16.gmra.mxu3 %v291_v43 }
  0x73   : > { %514 = vmatmul.bf16.gmra.mxu0 %v292_v48 }
  0x74   : > { %563 = vmatmul.bf16.gmra.mxu1 %v293_v49 }
  0x75   : > { %612 = vmatmul.bf16.gmra.mxu2 %v292_v48 }
  0x76   : > { %661 = vmatmul.bf16.gmra.mxu3 %v293_v49 }
  0x83   : > { %519 = vmatmul.bf16.gmra.mxu0 %v294_v54 }
  0x84   : > { %568 = vmatmul.bf16.gmra.mxu1 %v295_v55 }
  0x85   : > { %617 = vmatmul.bf16.gmra.mxu2 %v294_v54 }
  0x86   : > { %666 = vmatmul.bf16.gmra.mxu3 %v295_v55 }
  0x93   : > { %524 = vmatmul.bf16.gmra.mxu0 %v296_v60 }
  0x94   : > { %573 = vmatmul.bf16.gmra.mxu1 %v297_v61 }
  0x95   : > { %622 = vmatmul.bf16.gmra.mxu2 %v296_v60 }
  0x96   : > { %671 = vmatmul.bf16.gmra.mxu3 %v297_v61 }
  0xa3   : > { %529 = vmatmul.bf16.gmra.mxu0 %v298_v2 }
  0xa4   : > { %578 = vmatmul.bf16.gmra.mxu1 %v299_v3 }
  0xa5   : > { %627 = vmatmul.bf16.gmra.mxu2 %v298_v2 }
  0xa6   : > { %676 = vmatmul.bf16.gmra.mxu3 %v299_v3 }
  0xb3   : > { %534 = vmatmul.bf16.gmra.mxu0 %v300_v8 }
  0xb4   : > { %583 = vmatmul.bf16.gmra.mxu1 %v301_v9 }
  0xb5   : > { %632 = vmatmul.bf16.gmra.mxu2 %v300_v8 }
  0xb6   : > { %681 = vmatmul.bf16.gmra.mxu3 %v301_v9 }
  0xc3   : > { %539 = vmatmul.bf16.gmra.mxu0 %v302_v14 }
  0xc4   : > { %588 = vmatmul.bf16.gmra.mxu1 %v303_v15 }
  0xc5   : > { %637 = vmatmul.bf16.gmra.mxu2 %v302_v14 }
  0xc6   : > { %686 = vmatmul.bf16.gmra.mxu3 %v303_v15 }
  0xd0   : > { %v505_v16 = vpop.f32.mrf.mxu0 }
  0xd1   : > { %v554_v17 = vpop.f32.mrf.mxu1 }
  0xd2   : > { %v555_v18 = vadd.f32 %v554_v17, %v505_v16 }
  0xd4   : > { %v745_v24 = vmul.f32 %v555_v18, %v555_v18 }
  0xd8   : > { %v603_v19 = vpop.f32.mrf.mxu2  ;;  %v507_v21 = vpop.f32.mrf.mxu0 }
  0xd9   : > { %v652_v20 = vpop.f32.mrf.mxu3  ;;  %v556_v23 = vpop.f32.mrf.mxu1 }
  0xda   : > { %v653_v22 = vadd.f32 %v652_v20, %v603_v19  ;;  %v557_v25 = vadd.f32 %v556_v23, %v507_v21 }
  0xdc   : > { %v825_v26 = vpack.c.bf16 %v653_v22, %v555_v18  ;;  %v692_v27 = vadd.f32 %v557_v25, %v555_v18  ;;  %v747_v28 = vmul.f32 %v557_v25, %v557_v25  ;;  %v746_v36 = vmul.f32 %v653_v22, %v653_v22 }
  0xde   : > { %841 = vst [vmem:[%s1687_s26] sm:$0xff] %v825_v26  ;;  %v777_v29 = vadd.f32 %v747_v28, %v745_v24 }
  0xe0   : > { %v605_v30 = vpop.f32.mrf.mxu2  ;;  %v510_v32 = vpop.f32.mrf.mxu0 }
  0xe1   : > { %v654_v31 = vpop.f32.mrf.mxu3  ;;  %v559_v34 = vpop.f32.mrf.mxu1 }
  0xe2   : > { %v655_v33 = vadd.f32 %v654_v31, %v605_v30  ;;  %v560_v35 = vadd.f32 %v559_v34, %v510_v32 }
  0xe4   : > { %v713_v37 = vadd.f32 %v655_v33, %v653_v22  ;;  %v748_v38 = vmul.f32 %v655_v33, %v655_v33  ;;  %v826_v39 = vpack.c.bf16 %v655_v33, %v557_v25  ;;  %v693_v40 = vadd.f32 %v692_v27, %v560_v35 }
  0xe5   : > { %v749_v41 = vmul.f32 %v560_v35, %v560_v35 }
  0xe6   : > { %v798_v42 = vadd.f32 %v748_v38, %v746_v36  ;;  %842 = vst [vmem:[%s1687_s26 + $0x8] sm:$0xff] %v826_v39 }
  0xe7   : > { %v778_v43 = vadd.f32 %v777_v29, %v749_v41 }
  0xe8   : > { %v608_v44 = vpop.f32.mrf.mxu2  ;;  %v512_v46 = vpop.f32.mrf.mxu0 }
  0xe9   : > { %v657_v45 = vpop.f32.mrf.mxu3  ;;  %v561_v48 = vpop.f32.mrf.mxu1 }
  0xea   : > { %v658_v47 = vadd.f32 %v657_v45, %v608_v44  ;;  %v562_v49 = vadd.f32 %v561_v48, %v512_v46 }
  0xec   : > { %v714_v50 = vadd.f32 %v713_v37, %v658_v47  ;;  %v750_v51 = vmul.f32 %v658_v47, %v658_v47  ;;  %v827_v52 = vpack.c.bf16 %v658_v47, %v560_v35  ;;  %v694_v53 = vadd.f32 %v693_v40, %v562_v49 }
  0xed   : > { %v751_v54 = vmul.f32 %v562_v49, %v562_v49 }
  0xee   : > { %v799_v55 = vadd.f32 %v798_v42, %v750_v51  ;;  %843 = vst [vmem:[%s1687_s26 + $0x10] sm:$0xff] %v827_v52 }
  0xef   : > { %v779_v56 = vadd.f32 %v778_v43, %v751_v54 }
  0xf0   : > { %v610_v57 = vpop.f32.mrf.mxu2  ;;  %v515_v59 = vpop.f32.mrf.mxu0 }
  0xf1   : > { %v659_v58 = vpop.f32.mrf.mxu3  ;;  %v564_v61 = vpop.f32.mrf.mxu1 }
  0xf2   : > { %v660_v60 = vadd.f32 %v659_v58, %v610_v57  ;;  %v565_v62 = vadd.f32 %v564_v61, %v515_v59 }
  0xf4   : > { %v715_v63 = vadd.f32 %v714_v50, %v660_v60  ;;  %v752_v0 = vmul.f32 %v660_v60, %v660_v60  ;;  %v828_v1 = vpack.c.bf16 %v660_v60, %v562_v49  ;;  %v1692_v2 = vadd.f32 %v694_v53, %v565_v62 }
  0xf5   : > { %v753_v3 = vmul.f32 %v565_v62, %v565_v62 }
  0xf6   : > { %v800_v4 = vadd.f32 %v799_v55, %v752_v0  ;;  %844 = vst [vmem:[%s1687_s26 + $0x18] sm:$0xff] %v828_v1 }
  0xf7   : > { %v1695_v5 = vadd.f32 %v779_v56, %v753_v3 }
  0xf8   : > { %v613_v6 = vpop.f32.mrf.mxu2  ;;  %v517_v8 = vpop.f32.mrf.mxu0 }
  0xf9   : > { %v662_v7 = vpop.f32.mrf.mxu3  ;;  %v566_v10 = vpop.f32.mrf.mxu1 }
  0xfa   : > { %v663_v9 = vadd.f32 %v662_v7, %v613_v6  ;;  %v567_v18 = vadd.f32 %v566_v10, %v517_v8 }
  0xfc   : > { %v1697_v11 = vadd.f32 %v715_v63, %v663_v9  ;;  %v754_v12 = vmul.f32 %v663_v9, %v663_v9  ;;  %v829_v13 = vpack.c.bf16 %v663_v9, %v565_v62  ;;  %v755_v0 = vmul.f32 %v567_v18, %v567_v18 }
  0xfd   : > { %v696_v3 = vadd.f32 %v1692_v2, %v567_v18 }
  0xfe   : > { %v1699_v14 = vadd.f32 %v800_v4, %v754_v12  ;;  %845 = vst [vmem:[%s1687_s26 + $0x20] sm:$0xff] %v829_v13  ;;  %v781_v12 = vadd.f32 %v1695_v5, %v755_v0 }
 0x100   : > { %v615_v15 = vpop.f32.mrf.mxu2  ;;  %v520_v17 = vpop.f32.mrf.mxu0 }
 0x101   : > { %v664_v16 = vpop.f32.mrf.mxu3  ;;  %v569_v20 = vpop.f32.mrf.mxu1 }
 0x102   : > { %v1702_v19 = vadd.f32 %v664_v16, %v615_v15  ;;  %v570_v25 = vadd.f32 %v569_v20, %v520_v17 }
 0x104   : > { %v830_v21 = vpack.c.bf16 %v1702_v19, %v567_v18  ;;  %v757_v4 = vmul.f32 %v570_v25, %v570_v25  ;;  %v697_v13 = vadd.f32 %v696_v3, %v570_v25  ;;  %v756_v16 = vmul.f32 %v1702_v19, %v1702_v19 }
 0x106   : > { %846 = vst [vmem:[%s1687_s26 + $0x28] sm:$0xff] %v830_v21  ;;  %v782_v20 = vadd.f32 %v781_v12, %v757_v4 }
 0x108   : > { %v618_v22 = vpop.f32.mrf.mxu2  ;;  %v522_v24 = vpop.f32.mrf.mxu0 }
 0x109   : > { %v667_v23 = vpop.f32.mrf.mxu3  ;;  %v571_v27 = vpop.f32.mrf.mxu1 }
 0x10a   : > { %v1706_v26 = vadd.f32 %v667_v23, %v618_v22  ;;  %v572_v32 = vadd.f32 %v571_v27, %v522_v24  ;;  %v717_v22 = vadd.f32 %v1697_v11, %v1702_v19 }
 0x10c   : > { %v831_v28 = vpack.c.bf16 %v1706_v26, %v570_v25  ;;  %v759_v15 = vmul.f32 %v572_v32, %v572_v32  ;;  %v698_v21 = vadd.f32 %v697_v13, %v572_v32  ;;  %v758_v18 = vmul.f32 %v1706_v26, %v1706_v26 }
 0x10d   : > { %v802_v25 = vadd.f32 %v1699_v14, %v756_v16 }
 0x10e   : > { %847 = vst [vmem:[%s1687_s26 + $0x30] sm:$0xff] %v831_v28  ;;  %v783_v23 = vadd.f32 %v782_v20, %v759_v15 }
 0x110   : > { %v620_v29 = vpop.f32.mrf.mxu2  ;;  %v525_v31 = vpop.f32.mrf.mxu0 }
 0x111   : > { %v669_v30 = vpop.f32.mrf.mxu3  ;;  %v574_v34 = vpop.f32.mrf.mxu1 }
 0x112   : > { %v1710_v33 = vadd.f32 %v669_v30, %v620_v29  ;;  %v575_v39 = vadd.f32 %v574_v34, %v525_v31  ;;  %v718_v29 = vadd.f32 %v717_v22, %v1706_v26 }
 0x114   : > { %v832_v35 = vpack.c.bf16 %v1710_v33, %v572_v32  ;;  %v761_v2 = vmul.f32 %v575_v39, %v575_v39  ;;  %v699_v24 = vadd.f32 %v698_v21, %v575_v39  ;;  %v760_v27 = vmul.f32 %v1710_v33, %v1710_v33 }
 0x116   : > { %848 = vst [vmem:[%s1687_s26 + $0x38] sm:$0xff] %v832_v35  ;;  %v784_v30 = vadd.f32 %v783_v23, %v761_v2 }
 0x118   : > { %v623_v36 = vpop.f32.mrf.mxu2  ;;  %v527_v38 = vpop.f32.mrf.mxu0 }
 0x119   : > { %v672_v37 = vpop.f32.mrf.mxu3  ;;  %v576_v41 = vpop.f32.mrf.mxu1 }
 0x11a   : > { %v1714_v40 = vadd.f32 %v672_v37, %v623_v36  ;;  %v577_v46 = vadd.f32 %v576_v41, %v527_v38  ;;  %v803_v36 = vadd.f32 %v802_v25, %v758_v18 }
 0x11c   : > { %v833_v42 = vpack.c.bf16 %v1714_v40, %v575_v39  ;;  %v763_v5 = vmul.f32 %v577_v46, %v577_v46  ;;  %v700_v31 = vadd.f32 %v699_v24, %v577_v46  ;;  %v762_v11 = vmul.f32 %v1714_v40, %v1714_v40 }
 0x11e   : > { %849 = vst [vmem:[%s1687_s26 + $0x40] sm:$0xff] %v833_v42  ;;  %v785_v14 = vadd.f32 %v784_v30, %v763_v5  ;;  %v719_v42 = vadd.f32 %v718_v29, %v1710_v33 }
 0x120   : > { %v625_v43 = vpop.f32.mrf.mxu2  ;;  %v530_v45 = vpop.f32.mrf.mxu0 }
 0x121   : > { %v674_v44 = vpop.f32.mrf.mxu3  ;;  %v579_v48 = vpop.f32.mrf.mxu1 }
 0x122   : > { %v1718_v47 = vadd.f32 %v674_v44, %v625_v43  ;;  %v580_v53 = vadd.f32 %v579_v48, %v530_v45  ;;  %v804_v43 = vadd.f32 %v803_v36, %v760_v27 }
 0x124   : > { %v834_v49 = vpack.c.bf16 %v1718_v47, %v577_v46  ;;  %v765_v32 = vmul.f32 %v580_v53, %v580_v53  ;;  %v701_v39 = vadd.f32 %v700_v31, %v580_v53  ;;  %v764_v26 = vmul.f32 %v1718_v47, %v1718_v47 }
 0x126   : > { %850 = vst [vmem:[%s1687_s26 + $0x48] sm:$0xff] %v834_v49  ;;  %v786_v45 = vadd.f32 %v785_v14, %v765_v32 }
 0x128   : > { %v628_v50 = vpop.f32.mrf.mxu2  ;;  %v532_v52 = vpop.f32.mrf.mxu0 }
 0x129   : > { %v677_v51 = vpop.f32.mrf.mxu3  ;;  %v581_v55 = vpop.f32.mrf.mxu1 }
 0x12a   : > { %v1722_v54 = vadd.f32 %v677_v51, %v628_v50  ;;  %v582_v60 = vadd.f32 %v581_v55, %v532_v52  ;;  %v720_v50 = vadd.f32 %v719_v42, %v1714_v40  ;;  %v805_v51 = vadd.f32 %v804_v43, %v762_v11 }
 0x12c   : > { %v835_v56 = vpack.c.bf16 %v1722_v54, %v580_v53  ;;  %v767_v41 = vmul.f32 %v582_v60, %v582_v60  ;;  %v702_v46 = vadd.f32 %v701_v39, %v582_v60  ;;  %v766_v52 = vmul.f32 %v1722_v54, %v1722_v54 }
 0x12d   : > { %v721_v33 = vadd.f32 %v720_v50, %v1718_v47 }
 0x12e   : > { %851 = vst [vmem:[%s1687_s26 + $0x50] sm:$0xff] %v835_v56  ;;  %v787_v53 = vadd.f32 %v786_v45, %v767_v41 }
 0x130   : > { %v630_v57 = vpop.f32.mrf.mxu2  ;;  %v535_v59 = vpop.f32.mrf.mxu0 }
 0x131   : > { %v679_v58 = vpop.f32.mrf.mxu3  ;;  %v584_v62 = vpop.f32.mrf.mxu1 }
 0x132   : > { %v1726_v61 = vadd.f32 %v679_v58, %v630_v57  ;;  %v585_v8 = vadd.f32 %v584_v62, %v535_v59  ;;  %v806_v57 = vadd.f32 %v805_v51, %v764_v26 }
 0x134   : > { %v836_v63 = vpack.c.bf16 %v1726_v61, %v582_v60  ;;  %v769_v48 = vmul.f32 %v585_v8, %v585_v8  ;;  %v703_v55 = vadd.f32 %v702_v46, %v585_v8  ;;  %v768_v58 = vmul.f32 %v1726_v61, %v1726_v61 }
 0x135   : > { %v807_v3 = vadd.f32 %v806_v57, %v766_v52 }
 0x136   : > { %852 = vst [vmem:[%s1687_s26 + $0x58] sm:$0xff] %v836_v63  ;;  %v788_v60 = vadd.f32 %v787_v53, %v769_v48 }
 0x137   : > { %v808_v13 = vadd.f32 %v807_v3, %v768_v58 }
 0x138   : > { %v633_v1 = vpop.f32.mrf.mxu2  ;;  %v537_v7 = vpop.f32.mrf.mxu0 }
 0x139   : > { %v682_v6 = vpop.f32.mrf.mxu3  ;;  %v586_v10 = vpop.f32.mrf.mxu1 }
 0x13a   : > { %v1731_v9 = vadd.f32 %v682_v6, %v633_v1  ;;  %v587_v19 = vadd.f32 %v586_v10, %v537_v7  ;;  %v722_v1 = vadd.f32 %v721_v33, %v1722_v54 }
 0x13c   : > { %v837_v17 = vpack.c.bf16 %v1731_v9, %v585_v8  ;;  %v771_v56 = vmul.f32 %v587_v19, %v587_v19  ;;  %v704_v62 = vadd.f32 %v703_v55, %v587_v19  ;;  %v770_v47 = vmul.f32 %v1731_v9, %v1731_v9 }
 0x13d   : > { %v723_v12 = vadd.f32 %v722_v1, %v1726_v61 }
 0x13e   : > { %853 = vst [vmem:[%s1687_s26 + $0x60] sm:$0xff] %v837_v17  ;;  %v789_v7 = vadd.f32 %v788_v60, %v771_v56  ;;  %v809_v2 = vadd.f32 %v808_v13, %v770_v47 }
 0x13f   : > { %v724_v21 = vadd.f32 %v723_v12, %v1731_v9 }
 0x140   : > { %v635_v28 = vpop.f32.mrf.mxu2  ;;  %v540_v35 = vpop.f32.mrf.mxu0 }
 0x141   : > { %v684_v34 = vpop.f32.mrf.mxu3  ;;  %v589_v38 = vpop.f32.mrf.mxu1 }
 0x142   : > { %v685_v37 = vadd.f32 %v684_v34, %v635_v28  ;;  %v590_v49 = vadd.f32 %v589_v38, %v540_v35 }
 0x144   : > { %v838_v44 = vpack.c.bf16 %v685_v37, %v587_v19  ;;  %v773_v63 = vmul.f32 %v590_v49, %v590_v49  ;;  %v705_v8 = vadd.f32 %v704_v62, %v590_v49  ;;  %v772_v16 = vmul.f32 %v685_v37, %v685_v37 }
 0x145   : > { %v725_v24 = vadd.f32 %v724_v21, %v685_v37 }
 0x146   : > { %854 = vst [vmem:[%s1687_s26 + $0x68] sm:$0xff] %v838_v44  ;;  %v790_v17 = vadd.f32 %v789_v7, %v773_v63  ;;  %v810_v5 = vadd.f32 %v809_v2, %v772_v16 }
 0x148   : > { %v638_v59 = vpop.f32.mrf.mxu2  ;;  %v542_v0 = vpop.f32.mrf.mxu0 }
 0x149   : > { %v687_v40 = vpop.f32.mrf.mxu3  ;;  %v591_v6 = vpop.f32.mrf.mxu1 }
 0x14a   : > { %v688_v4 = vadd.f32 %v687_v40, %v638_v59  ;;  %v592_v10 = vadd.f32 %v591_v6, %v542_v0 }
 0x14c   : > { %v839_v15 = vpack.c.bf16 %v688_v4, %v590_v49  ;;  %v706_v20 = vadd.f32 %v705_v8, %v592_v10  ;;  %v775_v54 = vmul.f32 %v592_v10, %v592_v10  ;;  %v774_v18 = vmul.f32 %v688_v4, %v688_v4 }
 0x14d   : > { %v726_v28 = vadd.f32 %v725_v24, %v688_v4 }
 0x14e   : > { %855 = vst [vmem:[%s1687_s26 + $0x70] sm:$0xff] %v839_v15  ;;  %v707_v22 = vrot.slane %v706_v20, 4  ;;  %v791_v23 = vadd.f32 %v790_v17, %v775_v54  ;;  %v811_v30 = vadd.f32 %v810_v5, %v774_v18 }
 0x150   : > { %v640_v61 = vpop.f32.mrf.mxu2  ;;  %v792_v25 = vrot.slane %v791_v23, 4  ;;  %v708_v9 = vadd.f32 %v707_v22, %v706_v20 }
 0x151   : > { %v689_v27 = vpop.f32.mrf.mxu3 }
 0x152   : > { %v690_v29 = vadd.f32 %v689_v27, %v640_v61  ;;  %v793_v31 = vadd.f32 %v792_v25, %v791_v23  ;;  %v709_v36 = vrot.slane %v708_v9, 2 }
 0x154   : > { %v727_v32 = vadd.f32 %v726_v28, %v690_v29  ;;  %v776_v34 = vmul.f32 %v690_v29, %v690_v29  ;;  %v840_v35 = vpack.c.bf16 %v690_v29, %v592_v10 }
 0x156   : > { %v728_v11 = vrot.slane %v727_v32, 4  ;;  %v812_v19 = vadd.f32 %v811_v30, %v776_v34  ;;  %856 = vst [vmem:[%s1687_s26 + $0x78] sm:$0xff] %v840_v35 }
 0x157   : > { %1406 = shalt.err (!%p1403_p10)
}
 0x158   : > { %s1516_s26 = smov 128   ;;  %s1517_s24 = smov 8   ;;  %v794_v37 = vrot.slane %v793_v31, 2  ;;  %v729_v38 = vadd.f32 %v728_v11, %v727_v32  ;;  %v813_v14 = vrot.slane %v812_v19, 4  ;;  %v710_v39 = vadd.f32 %v709_v36, %v708_v9 }
 0x159   : > { %1252 = dma.vmem_to_hbm [thread:$0]  (%p1612_p7), %s1769_s11, 2048, %s884_s12, %s858_s13, %s1516_s26, %s1516_s26, %s1517_s24   ;;  %v740_v49 = vlaneseq  ;;  %vm737_vm0 = vcmask 1040384  }
 0x15a   : > { %v730_v41 = vrot.slane %v729_v38, 2  ;;  %v814_v42 = vadd.f32 %v813_v14, %v812_v19  ;;  %s1070_s27 = sshll.u32 %s1640_s25, 1  ;;  %s1206_s28 = sshll.u32 %s1564_s19, 1  ;;  %v795_v43 = vadd.f32 %v794_v37, %v793_v31  ;;  %v711_v45 = vrot.slane %v710_v39, 1 }
 0x15b   : > { %s896_s10 = scalar_lea.hbm %s1857_s3, %s1206_s28  ;;  %s862_s11 = sand.u32 1, %s1564_s19   ;;  %vm1793_vm1 = vcmp.lt.s32.totalorder %v740_v49, 256 }
 0x15c   : > { %v731_v26 = vadd.f32 %v730_v41, %v729_v38  ;;  %v815_v44 = vrot.slane %v814_v42, 2  ;;  %s910_s23 = scalar_lea.hbm %s1858_s4, %s1206_s28  ;;  %v796_v50 = vrot.slane %v795_v43, 1  ;;  %s246_s25 = scalar_lea.vmem [#allocation8], %s1070_s27  ;;  %v712_v53 = vadd.f32 %v711_v45, %v710_v39 }
 0x15d   : > { %s898_s7 = sshll.u32 %s246_s25, 4  ;;  %s900_s5 = sshll.u32 %s896_s10, 4  ;;  %s899_s7 = int_to_ptr.vmem [resolvable:$true] %s898_s7  ;;  %s901_s5 = int_to_ptr.hbm [resolvable:$true] %s900_s5 }
 0x15e   : > { %v732_v46 = vrot.slane %v731_v26, 1  ;;  %v816_v48 = vadd.f32 %v815_v44, %v814_v42  ;;  %s914_s6 = sshll.u32 %s910_s23, 4  ;;  %s253_s19 = scalar_lea.vmem [#allocation10], %s1070_s27  ;;  %v797_v57 = vadd.f32 %v796_v50, %v795_v43  ;;  %s1802_s6 = int_to_ptr.hbm [resolvable:$true] %s914_s6 }
 0x15f   : > { %s912_s21 = sshll.u32 %s253_s19, 4  ;;  %s1804_s26 = scalar_lea.sflag [#allocation9], %s862_s11  ;;  %s1800_s21 = int_to_ptr.vmem [resolvable:$true] %s912_s21 }
 0x160   : > { %v733_v51 = vadd.f32 %v732_v46, %v731_v26  ;;  %v817_v52 = vrot.slane %v816_v48, 1  ;;  %s1421_s24 = sshra.s32 %s901_s5, 4  ;;  %s1427_s14 = scalar_lea.hbm %s1857_s3, 4  ;;  %s1422_s24 = int_to_ptr.hbm [resolvable:$true] %s1421_s24 }
 0x161   : > { %s1423_s28 = scalar_lea.hbm %s1422_s24, 2  ;;  %p1428_p3 = scmp.lt.s32.totalorder %s1422_s24, %s1857_s3 }
 0x162   : > { %v736_v55 = vrot.slane %v733_v51, 7  ;;  %v818_v56 = vadd.f32 %v817_v52, %v816_v48  ;;  %p1424_p12 = scmp.ne.s32.totalorder %s1422_s24, %s1423_s28  ;;  %p1429_p5 = scmp.lt.s32.totalorder %s1427_s14, %s1423_s28 }
 0x164   : > { %v821_v58 = vrot.slane %v818_v56, 7  ;;  %v738_v59 = vsel %vm737_vm0, %v712_v53, %v736_v55  ;;  %p1425_p13 = pnand %p1424_p12, %p1612_p7  ;;  %p1430_p1 = por %p1429_p5, %p1428_p3 }
 0x165   : > { %744 = vst.msk [vmem:[%s246_s25] sm:$0x3] %vm1793_vm1, %v738_v59 }
 0x166   : > { %p1426_p0 = pneg %p1425_p13 }
 0x168   : > { %p1431_p4 = pnand %p1430_p1, %p1426_p0 }
 0x16a   : > { %1434 = shalt.err (!%p1431_p4)
}
 0x16b   : > { %1253 = dma.vmem_to_hbm [thread:$0]  (%p1612_p7), %s899_s7, 32, %s901_s5, %s1804_s26   ;;  %v822_v60 = vsel %vm737_vm0, %v797_v57, %v821_v58 }
 0x16c   : > { %824 = vst.msk [vmem:[%s253_s19] sm:$0x3] %vm1793_vm1, %v822_v60  ;;  %s1449_s11 = sshra.s32 %s1802_s6, 4  ;;  %s1455_s24 = scalar_lea.hbm %s1858_s4, 4  ;;  %s1450_s11 = int_to_ptr.hbm [resolvable:$true] %s1449_s11 }
 0x16d   : > { %s1451_s13 = scalar_lea.hbm %s1450_s11, 2  ;;  %p1456_p2 = scmp.lt.s32.totalorder %s1450_s11, %s1858_s4 }
 0x16e   : > { %p1452_p8 = scmp.ne.s32.totalorder %s1450_s11, %s1451_s13  ;;  %p1457_p10 = scmp.lt.s32.totalorder %s1455_s24, %s1451_s13 }
 0x170   : > { %p1453_p11 = pnand %p1452_p8, %p1612_p7  ;;  %p1458_p12 = por %p1457_p10, %p1456_p2 }
 0x172   : > { %p1454_p9 = pneg %p1453_p11 }
 0x174   : > { %p1459_p13 = pnand %p1458_p12, %p1454_p9 }
 0x176   : > { %1462 = shalt.err (!%p1459_p13)
}
 0x177   : > { %1254 = dma.vmem_to_hbm [thread:$0]  (%p1612_p7), %s1800_s21, 32, %s1802_s6, %s1804_s26  }
 0x178 PF: > { %s926_s7 = sand.u32 1, %s1497_s15   ;;  %p1866_p0 = scmp.ge.s32.totalorder %s1509_s18, 2 }
 0x179   : > { %s927_s5 = scalar_lea.sflag [#allocation4], %s926_s7 }
 0x17a   : > { %p1267_p3 = pnand %p1866_p0, %p1580_p6 }
 0x17c   : > { %p1268_p5 = pneg %p1267_p3 }
 0x17e   : > { %1488 = dma.done.wait (%p1268_p5), %s927_s5, 2048  }
 0x17f   : > { %1490 = vsyncadd (%p1268_p5), %s927_s5, 4294965248  ;;  %s936_s19 = sand.u32 1, %s1058_s20  }
 0x180   : > { %s937_s9 = scalar_lea.sflag [#allocation9], %s936_s19 }
 0x181   : > { %1492 = dma.done.wait (%p1268_p5), %s937_s9, 64  }
 0x182   : > { %1494 = vsyncadd (%p1268_p5), %s937_s9, 4294967232  ;;  %p22_p7 = scmp.ge.s32.totalorder %s1598_s29, 4   ;;  %s1867_s15 = smov %s1501_s16 }
 0x183   : > { %s1868_s16 = smov %s1505_s17  ;;  %s1869_s17 = smov %s1608_s8 }
 0x184   : > { %s1870_s18 = smov %s1598_s29  ;;  %24 = sbr.rel (!%p22_p7) target bundleno = 8 (0x8), region = 109 }
 0x189   :  { %953 = vsyncpa [#allocation3], 1 }
 0x18a   :  { %955 = vsyncpa [#allocation3 + $0x1], 1 }
 0x18b   :  { %956 = vsyncpa [#allocation6], 1 }
 0x18c   :  { %957 = vsyncpa [#allocation4], 1 }
 0x18d   :  { %959 = vsyncpa [#allocation4 + $0x1], 1 }
 0x18e   :  { %960 = vsyncpa [#allocation9], 1 }
 0x18f   :  { %962 = vsyncpa [#allocation9 + $0x1], 1 }

</bundles_post_ra>
